<compile_context>
chip_gen: v6e
topology: v6e:2x2x1
jax: 0.10.0
libtpu: 0.0.40
codegen_flags: <defaults>
</compile_context>

<pallas_src>
import functools

import jax
import jax.numpy as jnp
from jax.experimental import pallas as pl
from jax.experimental.pallas import tpu as pltpu


def _round_up(v, m):
    return ((v + m - 1) // m) * m


def wealstm_kernel(x_ref, wx_ref, bg_ref, whh_ref, w2_ref, b2_ref,
                   out_ref, ys_ref, *, gate_stride):
    # One grid program == one batch element.
    # x_ref:   (1, L, N) bf16   this batch element's inputs (time-major inside)
    # wx_ref:  (N, G4) bf16     folded input->gate weights (W1 @ Wih), zero-padded
    # bg_ref:  (1, G4) f32      folded bias (b1 @ Wih), same padded layout
    # whh_ref: (N, G4) bf16     recurrent weights (lstm_1 has bias=False)
    # w2_ref:  (L, Hp) bf16     linear_2 weight, H padded to a 128-lane boundary
    # b2_ref:  (1, Hp) f32      linear_2 bias, padded
    # out_ref: (1, N, Hp) f32   lane-dense padded output block
    # ys_ref:  VMEM (L, N) f32  scratch: hidden states over time
    _, L, N = x_ref.shape
    GS = gate_stride                      # N (concat padding) or 128-mult (per-gate)

    # ---- input projection hoisted out of the recurrence: ONE matmul covering
    # ---- all timesteps of this batch element; bias broadcast added once. ------
    xb = x_ref[0]                                                   # (L, N) bf16
    gx = jnp.dot(xb, wx_ref[...],
                 preferred_element_type=jnp.float32) + bg_ref[...]  # (L, G4) f32

    # ---- LSTM recurrence: only h @ Whh + f32 gate math per step; gx[t] is a
    # ---- contiguous row read. --------------------------------------------------
    whh = whh_ref[...]
    h = jnp.zeros((1, N), jnp.float32)
    c = jnp.zeros((1, N), jnp.float32)
    for t in range(L):                    # static unroll; fine while L <= ~16
        gates = gx[t:t + 1, :] + jnp.dot(h.astype(jnp.bfloat16), whh,
                                         preferred_element_type=jnp.float32)
        # PyTorch LSTM gate order: i, f, g, o.
        i_g = jax.nn.sigmoid(gates[:, 0 * GS:0 * GS + N])
        f_g = jax.nn.sigmoid(gates[:, 1 * GS:1 * GS + N])
        g_g = jnp.tanh(gates[:, 2 * GS:2 * GS + N])
        o_g = jax.nn.sigmoid(gates[:, 3 * GS:3 * GS + N])
        c = f_g * c + i_g * g_g
        h = o_g * jnp.tanh(c)
        ys_ref[pl.ds(t, 1), :] = h

    # ---- linear_2 contracts the time axis: one trans-A MXU matmul per program
    # ---- (a single tiny (L,N) 2-D transpose feeds the MXU directly) into a
    # ---- lane-dense 128-padded output block. -----------------------------------
    ys_t = ys_ref[...].T.astype(jnp.bfloat16)                       # (N, L)
    out_b = jnp.dot(ys_t, w2_ref[...],
                    preferred_element_type=jnp.float32)             # (N, Hp)
    out_ref[0] = (out_b + b2_ref[...]).astype(out_ref.dtype)


def wealstm_forward(x, folded):
    """x: (B, L, N) float32; folded: output of fold_params. Returns (B, N, H)."""
    B, L, N = x.shape
    Hp = folded["w2"].shape[1]
    G4 = folded["wx"].shape[1]
    H = folded["out_dim"]

    kernel = functools.partial(wealstm_kernel, gate_stride=folded["gate_stride"])
    const2 = lambda b: (0, 0)             # weights: block index never changes -> no refetch

    out = pl.pallas_call(
        kernel,
        out_shape=jax.ShapeDtypeStruct((B, N, Hp), jnp.float32),
        grid=(B,),
        in_specs=[
            pl.BlockSpec((1, L, N), lambda b: (b, 0, 0)),   # x, one batch element
            pl.BlockSpec((N, G4), const2),                  # wx
            pl.BlockSpec((1, G4), const2),                  # bg
            pl.BlockSpec((N, G4), const2),                  # whh
            pl.BlockSpec((L, Hp), const2),                  # w2 (H padded to 128)
            pl.BlockSpec((1, Hp), const2),                  # b2 (padded)
        ],
        out_specs=pl.BlockSpec((1, N, Hp), lambda b: (b, 0, 0)),
        scratch_shapes=[pltpu.VMEM((L, N), jnp.float32)],   # hidden states over time
        compiler_params=pltpu.CompilerParams(
            dimension_semantics=("parallel",)),             # independent per batch element
    )(x.astype(jnp.bfloat16), folded["wx"], folded["bg"], folded["whh"],
      folded["w2"], folded["b2"])
    return out[:, :, :H]                  # drop the lane padding in the wrapper


def init_params(key, num_nodes, hidden_dim, seq_len):
    """Torch-layout parameters of WeaLSTM (transposed to right-multiply form)."""
    N, H, L = num_nodes, hidden_dim, seq_len
    ks = jax.random.split(key, 6)
    s = 0.1
    W1 = s * jax.random.normal(ks[0], (2 * N, N), jnp.float32)       # linear_1.weight (out, in)
    b1 = s * jax.random.normal(ks[1], (2 * N,), jnp.float32)         # linear_1.bias
    Wih = s * jax.random.normal(ks[2], (4 * N, 2 * N), jnp.float32)  # lstm_1.weight_ih_l0
    Whh = s * jax.random.normal(ks[3], (4 * N, N), jnp.float32)      # lstm_1.weight_hh_l0
    W2 = s * jax.random.normal(ks[4], (H, L), jnp.float32)           # linear_2.weight
    b2 = s * jax.random.normal(ks[5], (H,), jnp.float32)             # linear_2.bias
    return {
        "w1": W1.T, "b1": b1.reshape(1, 2 * N),
        "wih": Wih.T, "whh": Whh.T,
        "w2": W2.T, "b2": b2.reshape(1, H),
    }


def fold_params(params):
    """Fold linear_1 into the LSTM input weights (exact, f32 HIGHEST), pad the
    gate and output dims for lane-dense access, and cast matmul operands to
    bf16 (biases stay f32; they are added after the f32-accumulated matmuls)."""
    w1, b1 = params["w1"], params["b1"]            # (N, 2N), (1, 2N)
    wih, whh = params["wih"], params["whh"]        # (2N, 4N), (N, 4N)
    w2, b2 = params["w2"], params["b2"]            # (L, H), (1, H)
    N = whh.shape[0]
    H = w2.shape[1]
    hp = jax.lax.Precision.HIGHEST
    wx = jnp.dot(w1, wih, precision=hp)            # (N, 4N) = W1 @ Wih
    bg = jnp.dot(b1, wih, precision=hp)            # (1, 4N) = b1 @ Wih

    if N >= 128:
        # Per-gate padding: each gate slice starts on a 128-lane boundary.
        G = _round_up(N, 128)

        def pad_gates(m):
            blocks = []
            for g in range(4):
                blk = m[..., g * N:(g + 1) * N]
                if G > N:
                    blk = jnp.concatenate(
                        [blk, jnp.zeros(m.shape[:-1] + (G - N,), m.dtype)], axis=-1)
                blocks.append(blk)
            return jnp.concatenate(blocks, axis=-1)
        gate_stride = G
    else:
        # Small N: pad the concatenated 4N block once to the next 128 multiple
        # (avoids 128/N x wasted MXU columns); gates are sliced at offsets g*N.
        G4 = _round_up(4 * N, 128)

        def pad_gates(m):
            if G4 == 4 * N:
                return m
            return jnp.concatenate(
                [m, jnp.zeros(m.shape[:-1] + (G4 - 4 * N,), m.dtype)], axis=-1)
        gate_stride = N

    Hp = _round_up(H, 128)

    def pad_h(m):
        if Hp == H:
            return m
        return jnp.concatenate(
            [m, jnp.zeros(m.shape[:-1] + (Hp - H,), m.dtype)], axis=-1)

    return {
        "wx": pad_gates(wx).astype(jnp.bfloat16),
        "whh": pad_gates(whh).astype(jnp.bfloat16),
        "w2": pad_h(w2).astype(jnp.bfloat16),
        "bg": pad_gates(bg),                       # f32
        "b2": pad_h(b2),                           # f32
        "gate_stride": gate_stride,
        "out_dim": H,
    }


def wealstm_ref(x, params):
    """Pure-JAX f32 reference mirroring the PyTorch WeaLSTM forward (unfolded)."""
    xt = jnp.transpose(x, (1, 0, 2))                      # (L, B, N)
    z = xt @ params["w1"] + params["b1"]                  # (L, B, 2N)
    L, B, _ = z.shape
    N = params["whh"].shape[0]
    h = jnp.zeros((B, N), jnp.float32)
    c = jnp.zeros((B, N), jnp.float32)
    ys = []
    for t in range(L):
        gates = z[t] @ params["wih"] + h @ params["whh"]
        i = jax.nn.sigmoid(gates[:, :N])
        f = jax.nn.sigmoid(gates[:, N:2 * N])
        g = jnp.tanh(gates[:, 2 * N:3 * N])
        o = jax.nn.sigmoid(gates[:, 3 * N:])
        c = f * c + i * g
        h = o * jnp.tanh(c)
        ys.append(h)
    ys = jnp.stack(ys, axis=0)                            # (L, B, N)
    return jnp.einsum('tbn,th->bnh', ys, params["w2"]) + params["b2"][0]


if __name__ == "__main__":
    B, L, N, H = 4, 8, 16, 32   # batch, seq_len, num_nodes, hidden_dim (small test shapes)
    key = jax.random.PRNGKey(0)
    kx, kp = jax.random.split(key)
    x = jax.random.normal(kx, (B, L, N), jnp.float32)
    params = init_params(kp, num_nodes=N, hidden_dim=H, seq_len=L)
    folded = fold_params(params)

    out = wealstm_forward(x, folded)
    out = jax.block_until_ready(out)

    ref = wealstm_ref(x, params)
    assert out.shape == (B, N, H), out.shape
    err = float(jnp.max(jnp.abs(out - ref)))
    # bf16 matmul operands (with f32 accumulation and f32 gate math) plus the
    # W1@Wih fold change rounding order vs. the f32 two-step reference; 1e-2
    # covers bf16 operand rounding at these magnitudes (typical max err ~1e-3).
    assert jnp.allclose(out, ref, atol=1e-2, rtol=1e-2), err
    print("KERNEL_OK")
</pallas_src>

<mosaic_0001>
module attributes {stable_mosaic.version = 11 : i64} {
  func.func @wealstm_kernel(%arg0: i32, %arg1: memref<1x8x16xbf16, #tpu.memory_space<vmem>>, %arg2: memref<16x128xbf16, #tpu.memory_space<vmem>>, %arg3: memref<1x128xf32, #tpu.memory_space<vmem>>, %arg4: memref<16x128xbf16, #tpu.memory_space<vmem>>, %arg5: memref<8x128xbf16, #tpu.memory_space<vmem>>, %arg6: memref<1x128xf32, #tpu.memory_space<vmem>>, %arg7: memref<1x16x128xf32, #tpu.memory_space<vmem>>, %arg8: memref<8x16xf32, #tpu.memory_space<vmem>>) attributes {dimension_semantics = [#tpu.dimension_semantics<parallel>], iteration_bounds = array<i64: 4>, scalar_prefetch = 0 : i64, scratch_operands = 1 : i64, tpu.core_type = #tpu.core_type<tc>, window_params = [{transform_indices = @transform_0, window_bounds = array<i64: 1, 8, 16>}, {pipeline_mode = #tpu.pipeline_mode<synchronous>, transform_indices = @transform_1, window_bounds = array<i64: 16, 128>}, {pipeline_mode = #tpu.pipeline_mode<synchronous>, transform_indices = @transform_2, window_bounds = array<i64: 1, 128>}, {pipeline_mode = #tpu.pipeline_mode<synchronous>, transform_indices = @transform_3, window_bounds = array<i64: 16, 128>}, {pipeline_mode = #tpu.pipeline_mode<synchronous>, transform_indices = @transform_4, window_bounds = array<i64: 8, 128>}, {pipeline_mode = #tpu.pipeline_mode<synchronous>, transform_indices = @transform_5, window_bounds = array<i64: 1, 128>}, {transform_indices = @transform_6, window_bounds = array<i64: 1, 16, 128>}]} {
    %c0 = arith.constant 0 : index
    %c0_0 = arith.constant 0 : index
    %c0_1 = arith.constant 0 : index
    %0 = vector.load %arg1[%c0, %c0_0, %c0_1] : memref<1x8x16xbf16, #tpu.memory_space<vmem>>, vector<1x8x16xbf16>
    %1 = vector.shape_cast %0 : vector<1x8x16xbf16> to vector<8x16xbf16>
    %c0_2 = arith.constant 0 : index
    %c0_3 = arith.constant 0 : index
    %2 = vector.load %arg2[%c0_2, %c0_3] : memref<16x128xbf16, #tpu.memory_space<vmem>>, vector<16x128xbf16>
    %cst = arith.constant dense<0.000000e+00> : vector<8x128xf32>
    %3 = tpu.matmul %1, %2, %cst {dimension_numbers = #tpu.dot_dimension_numbers<[1], [0], [0], [1], [0, 0, 1, 1], [], []>} : vector<8x16xbf16>, vector<16x128xbf16>, vector<8x128xf32> -> vector<8x128xf32>
    %c0_4 = arith.constant 0 : index
    %c0_5 = arith.constant 0 : index
    %4 = vector.load %arg3[%c0_4, %c0_5] : memref<1x128xf32, #tpu.memory_space<vmem>>, vector<1x128xf32>
    %5 = vector.broadcast %4 : vector<1x128xf32> to vector<8x128xf32>
    %6 = arith.addf %3, %5 : vector<8x128xf32>
    %c0_6 = arith.constant 0 : index
    %c0_7 = arith.constant 0 : index
    %7 = vector.load %arg4[%c0_6, %c0_7] : memref<16x128xbf16, #tpu.memory_space<vmem>>, vector<16x128xbf16>
    %cst_8 = arith.constant 0.000000e+00 : f32
    %8 = vector.broadcast %cst_8 : f32 to vector<1x16xf32>
    %cst_9 = arith.constant 0.000000e+00 : f32
    %9 = vector.broadcast %cst_9 : f32 to vector<1x16xf32>
    %10 = vector.extract_strided_slice %6 {offsets = [0, 0], sizes = [1, 128], strides = [1, 1]} : vector<8x128xf32> to vector<1x128xf32>
    %11 = arith.truncf %8 : vector<1x16xf32> to vector<1x16xbf16>
    %cst_10 = arith.constant dense<0.000000e+00> : vector<1x128xf32>
    %12 = tpu.matmul %11, %7, %cst_10 {dimension_numbers = #tpu.dot_dimension_numbers<[1], [0], [0], [1], [0, 0, 1, 1], [], []>} : vector<1x16xbf16>, vector<16x128xbf16>, vector<1x128xf32> -> vector<1x128xf32>
    %13 = arith.addf %10, %12 : vector<1x128xf32>
    %14 = vector.extract_strided_slice %13 {offsets = [0, 0], sizes = [1, 16], strides = [1, 1]} : vector<1x128xf32> to vector<1x16xf32>
    %15 = arith.negf %14 : vector<1x16xf32>
    %16 = math.exp %15 : vector<1x16xf32>
    %cst_11 = arith.constant 1.000000e+00 : f32
    %17 = vector.broadcast %cst_11 : f32 to vector<1x16xf32>
    %18 = arith.addf %17, %16 : vector<1x16xf32>
    %19 = arith.divf %17, %18 : vector<1x16xf32>
    %20 = vector.extract_strided_slice %13 {offsets = [0, 16], sizes = [1, 16], strides = [1, 1]} : vector<1x128xf32> to vector<1x16xf32>
    %21 = arith.negf %20 : vector<1x16xf32>
    %22 = math.exp %21 : vector<1x16xf32>
    %cst_12 = arith.constant 1.000000e+00 : f32
    %23 = vector.broadcast %cst_12 : f32 to vector<1x16xf32>
    %24 = arith.addf %23, %22 : vector<1x16xf32>
    %25 = arith.divf %23, %24 : vector<1x16xf32>
    %26 = vector.extract_strided_slice %13 {offsets = [0, 32], sizes = [1, 16], strides = [1, 1]} : vector<1x128xf32> to vector<1x16xf32>
    %27 = math.tanh %26 : vector<1x16xf32>
    %28 = vector.extract_strided_slice %13 {offsets = [0, 48], sizes = [1, 16], strides = [1, 1]} : vector<1x128xf32> to vector<1x16xf32>
    %29 = arith.negf %28 : vector<1x16xf32>
    %30 = math.exp %29 : vector<1x16xf32>
    %cst_13 = arith.constant 1.000000e+00 : f32
    %31 = vector.broadcast %cst_13 : f32 to vector<1x16xf32>
    %32 = arith.addf %31, %30 : vector<1x16xf32>
    %33 = arith.divf %31, %32 : vector<1x16xf32>
    %34 = arith.mulf %25, %9 : vector<1x16xf32>
    %35 = arith.mulf %19, %27 : vector<1x16xf32>
    %36 = arith.addf %34, %35 : vector<1x16xf32>
    %37 = math.tanh %36 : vector<1x16xf32>
    %38 = arith.mulf %33, %37 : vector<1x16xf32>
    %c0_14 = arith.constant 0 : index
    %c0_15 = arith.constant 0 : index
    %39 = vector.load %arg8[%c0_14, %c0_15] : memref<8x16xf32, #tpu.memory_space<vmem>>, vector<1x16xf32>
    tpu.vector_store %arg8[%c0_14, %c0_15], %38 {strides = array<i32>} : memref<8x16xf32, #tpu.memory_space<vmem>>, vector<1x16xf32>,
    %40 = vector.extract_strided_slice %6 {offsets = [1, 0], sizes = [1, 128], strides = [1, 1]} : vector<8x128xf32> to vector<1x128xf32>
    %41 = arith.truncf %38 : vector<1x16xf32> to vector<1x16xbf16>
    %cst_16 = arith.constant dense<0.000000e+00> : vector<1x128xf32>
    %42 = tpu.matmul %41, %7, %cst_16 {dimension_numbers = #tpu.dot_dimension_numbers<[1], [0], [0], [1], [0, 0, 1, 1], [], []>} : vector<1x16xbf16>, vector<16x128xbf16>, vector<1x128xf32> -> vector<1x128xf32>
    %43 = arith.addf %40, %42 : vector<1x128xf32>
    %44 = vector.extract_strided_slice %43 {offsets = [0, 0], sizes = [1, 16], strides = [1, 1]} : vector<1x128xf32> to vector<1x16xf32>
    %45 = arith.negf %44 : vector<1x16xf32>
    %46 = math.exp %45 : vector<1x16xf32>
    %cst_17 = arith.constant 1.000000e+00 : f32
    %47 = vector.broadcast %cst_17 : f32 to vector<1x16xf32>
    %48 = arith.addf %47, %46 : vector<1x16xf32>
    %49 = arith.divf %47, %48 : vector<1x16xf32>
    %50 = vector.extract_strided_slice %43 {offsets = [0, 16], sizes = [1, 16], strides = [1, 1]} : vector<1x128xf32> to vector<1x16xf32>
    %51 = arith.negf %50 : vector<1x16xf32>
    %52 = math.exp %51 : vector<1x16xf32>
    %cst_18 = arith.constant 1.000000e+00 : f32
    %53 = vector.broadcast %cst_18 : f32 to vector<1x16xf32>
    %54 = arith.addf %53, %52 : vector<1x16xf32>
    %55 = arith.divf %53, %54 : vector<1x16xf32>
    %56 = vector.extract_strided_slice %43 {offsets = [0, 32], sizes = [1, 16], strides = [1, 1]} : vector<1x128xf32> to vector<1x16xf32>
    %57 = math.tanh %56 : vector<1x16xf32>
    %58 = vector.extract_strided_slice %43 {offsets = [0, 48], sizes = [1, 16], strides = [1, 1]} : vector<1x128xf32> to vector<1x16xf32>
    %59 = arith.negf %58 : vector<1x16xf32>
    %60 = math.exp %59 : vector<1x16xf32>
    %cst_19 = arith.constant 1.000000e+00 : f32
    %61 = vector.broadcast %cst_19 : f32 to vector<1x16xf32>
    %62 = arith.addf %61, %60 : vector<1x16xf32>
    %63 = arith.divf %61, %62 : vector<1x16xf32>
    %64 = arith.mulf %55, %36 : vector<1x16xf32>
    %65 = arith.mulf %49, %57 : vector<1x16xf32>
    %66 = arith.addf %64, %65 : vector<1x16xf32>
    %67 = math.tanh %66 : vector<1x16xf32>
    %68 = arith.mulf %63, %67 : vector<1x16xf32>
    %c1 = arith.constant 1 : index
    %c0_20 = arith.constant 0 : index
    %69 = vector.load %arg8[%c1, %c0_20] : memref<8x16xf32, #tpu.memory_space<vmem>>, vector<1x16xf32>
    tpu.vector_store %arg8[%c1, %c0_20], %68 {strides = array<i32>} : memref<8x16xf32, #tpu.memory_space<vmem>>, vector<1x16xf32>,
    %70 = vector.extract_strided_slice %6 {offsets = [2, 0], sizes = [1, 128], strides = [1, 1]} : vector<8x128xf32> to vector<1x128xf32>
    %71 = arith.truncf %68 : vector<1x16xf32> to vector<1x16xbf16>
    %cst_21 = arith.constant dense<0.000000e+00> : vector<1x128xf32>
    %72 = tpu.matmul %71, %7, %cst_21 {dimension_numbers = #tpu.dot_dimension_numbers<[1], [0], [0], [1], [0, 0, 1, 1], [], []>} : vector<1x16xbf16>, vector<16x128xbf16>, vector<1x128xf32> -> vector<1x128xf32>
    %73 = arith.addf %70, %72 : vector<1x128xf32>
    %74 = vector.extract_strided_slice %73 {offsets = [0, 0], sizes = [1, 16], strides = [1, 1]} : vector<1x128xf32> to vector<1x16xf32>
    %75 = arith.negf %74 : vector<1x16xf32>
    %76 = math.exp %75 : vector<1x16xf32>
    %cst_22 = arith.constant 1.000000e+00 : f32
    %77 = vector.broadcast %cst_22 : f32 to vector<1x16xf32>
    %78 = arith.addf %77, %76 : vector<1x16xf32>
    %79 = arith.divf %77, %78 : vector<1x16xf32>
    %80 = vector.extract_strided_slice %73 {offsets = [0, 16], sizes = [1, 16], strides = [1, 1]} : vector<1x128xf32> to vector<1x16xf32>
    %81 = arith.negf %80 : vector<1x16xf32>
    %82 = math.exp %81 : vector<1x16xf32>
    %cst_23 = arith.constant 1.000000e+00 : f32
    %83 = vector.broadcast %cst_23 : f32 to vector<1x16xf32>
    %84 = arith.addf %83, %82 : vector<1x16xf32>
    %85 = arith.divf %83, %84 : vector<1x16xf32>
    %86 = vector.extract_strided_slice %73 {offsets = [0, 32], sizes = [1, 16], strides = [1, 1]} : vector<1x128xf32> to vector<1x16xf32>
    %87 = math.tanh %86 : vector<1x16xf32>
    %88 = vector.extract_strided_slice %73 {offsets = [0, 48], sizes = [1, 16], strides = [1, 1]} : vector<1x128xf32> to vector<1x16xf32>
    %89 = arith.negf %88 : vector<1x16xf32>
    %90 = math.exp %89 : vector<1x16xf32>
    %cst_24 = arith.constant 1.000000e+00 : f32
    %91 = vector.broadcast %cst_24 : f32 to vector<1x16xf32>
    %92 = arith.addf %91, %90 : vector<1x16xf32>
    %93 = arith.divf %91, %92 : vector<1x16xf32>
    %94 = arith.mulf %85, %66 : vector<1x16xf32>
    %95 = arith.mulf %79, %87 : vector<1x16xf32>
    %96 = arith.addf %94, %95 : vector<1x16xf32>
    %97 = math.tanh %96 : vector<1x16xf32>
    %98 = arith.mulf %93, %97 : vector<1x16xf32>
    %c2 = arith.constant 2 : index
    %c0_25 = arith.constant 0 : index
    %99 = vector.load %arg8[%c2, %c0_25] : memref<8x16xf32, #tpu.memory_space<vmem>>, vector<1x16xf32>
    tpu.vector_store %arg8[%c2, %c0_25], %98 {strides = array<i32>} : memref<8x16xf32, #tpu.memory_space<vmem>>, vector<1x16xf32>,
    %100 = vector.extract_strided_slice %6 {offsets = [3, 0], sizes = [1, 128], strides = [1, 1]} : vector<8x128xf32> to vector<1x128xf32>
    %101 = arith.truncf %98 : vector<1x16xf32> to vector<1x16xbf16>
    %cst_26 = arith.constant dense<0.000000e+00> : vector<1x128xf32>
    %102 = tpu.matmul %101, %7, %cst_26 {dimension_numbers = #tpu.dot_dimension_numbers<[1], [0], [0], [1], [0, 0, 1, 1], [], []>} : vector<1x16xbf16>, vector<16x128xbf16>, vector<1x128xf32> -> vector<1x128xf32>
    %103 = arith.addf %100, %102 : vector<1x128xf32>
    %104 = vector.extract_strided_slice %103 {offsets = [0, 0], sizes = [1, 16], strides = [1, 1]} : vector<1x128xf32> to vector<1x16xf32>
    %105 = arith.negf %104 : vector<1x16xf32>
    %106 = math.exp %105 : vector<1x16xf32>
    %cst_27 = arith.constant 1.000000e+00 : f32
    %107 = vector.broadcast %cst_27 : f32 to vector<1x16xf32>
    %108 = arith.addf %107, %106 : vector<1x16xf32>
    %109 = arith.divf %107, %108 : vector<1x16xf32>
    %110 = vector.extract_strided_slice %103 {offsets = [0, 16], sizes = [1, 16], strides = [1, 1]} : vector<1x128xf32> to vector<1x16xf32>
    %111 = arith.negf %110 : vector<1x16xf32>
    %112 = math.exp %111 : vector<1x16xf32>
    %cst_28 = arith.constant 1.000000e+00 : f32
    %113 = vector.broadcast %cst_28 : f32 to vector<1x16xf32>
    %114 = arith.addf %113, %112 : vector<1x16xf32>
    %115 = arith.divf %113, %114 : vector<1x16xf32>
    %116 = vector.extract_strided_slice %103 {offsets = [0, 32], sizes = [1, 16], strides = [1, 1]} : vector<1x128xf32> to vector<1x16xf32>
    %117 = math.tanh %116 : vector<1x16xf32>
    %118 = vector.extract_strided_slice %103 {offsets = [0, 48], sizes = [1, 16], strides = [1, 1]} : vector<1x128xf32> to vector<1x16xf32>
    %119 = arith.negf %118 : vector<1x16xf32>
    %120 = math.exp %119 : vector<1x16xf32>
    %cst_29 = arith.constant 1.000000e+00 : f32
    %121 = vector.broadcast %cst_29 : f32 to vector<1x16xf32>
    %122 = arith.addf %121, %120 : vector<1x16xf32>
    %123 = arith.divf %121, %122 : vector<1x16xf32>
    %124 = arith.mulf %115, %96 : vector<1x16xf32>
    %125 = arith.mulf %109, %117 : vector<1x16xf32>
    %126 = arith.addf %124, %125 : vector<1x16xf32>
    %127 = math.tanh %126 : vector<1x16xf32>
    %128 = arith.mulf %123, %127 : vector<1x16xf32>
    %c3 = arith.constant 3 : index
    %c0_30 = arith.constant 0 : index
    %129 = vector.load %arg8[%c3, %c0_30] : memref<8x16xf32, #tpu.memory_space<vmem>>, vector<1x16xf32>
    tpu.vector_store %arg8[%c3, %c0_30], %128 {strides = array<i32>} : memref<8x16xf32, #tpu.memory_space<vmem>>, vector<1x16xf32>,
    %130 = vector.extract_strided_slice %6 {offsets = [4, 0], sizes = [1, 128], strides = [1, 1]} : vector<8x128xf32> to vector<1x128xf32>
    %131 = arith.truncf %128 : vector<1x16xf32> to vector<1x16xbf16>
    %cst_31 = arith.constant dense<0.000000e+00> : vector<1x128xf32>
    %132 = tpu.matmul %131, %7, %cst_31 {dimension_numbers = #tpu.dot_dimension_numbers<[1], [0], [0], [1], [0, 0, 1, 1], [], []>} : vector<1x16xbf16>, vector<16x128xbf16>, vector<1x128xf32> -> vector<1x128xf32>
    %133 = arith.addf %130, %132 : vector<1x128xf32>
    %134 = vector.extract_strided_slice %133 {offsets = [0, 0], sizes = [1, 16], strides = [1, 1]} : vector<1x128xf32> to vector<1x16xf32>
    %135 = arith.negf %134 : vector<1x16xf32>
    %136 = math.exp %135 : vector<1x16xf32>
    %cst_32 = arith.constant 1.000000e+00 : f32
    %137 = vector.broadcast %cst_32 : f32 to vector<1x16xf32>
    %138 = arith.addf %137, %136 : vector<1x16xf32>
    %139 = arith.divf %137, %138 : vector<1x16xf32>
    %140 = vector.extract_strided_slice %133 {offsets = [0, 16], sizes = [1, 16], strides = [1, 1]} : vector<1x128xf32> to vector<1x16xf32>
    %141 = arith.negf %140 : vector<1x16xf32>
    %142 = math.exp %141 : vector<1x16xf32>
    %cst_33 = arith.constant 1.000000e+00 : f32
    %143 = vector.broadcast %cst_33 : f32 to vector<1x16xf32>
    %144 = arith.addf %143, %142 : vector<1x16xf32>
    %145 = arith.divf %143, %144 : vector<1x16xf32>
    %146 = vector.extract_strided_slice %133 {offsets = [0, 32], sizes = [1, 16], strides = [1, 1]} : vector<1x128xf32> to vector<1x16xf32>
    %147 = math.tanh %146 : vector<1x16xf32>
    %148 = vector.extract_strided_slice %133 {offsets = [0, 48], sizes = [1, 16], strides = [1, 1]} : vector<1x128xf32> to vector<1x16xf32>
    %149 = arith.negf %148 : vector<1x16xf32>
    %150 = math.exp %149 : vector<1x16xf32>
    %cst_34 = arith.constant 1.000000e+00 : f32
    %151 = vector.broadcast %cst_34 : f32 to vector<1x16xf32>
    %152 = arith.addf %151, %150 : vector<1x16xf32>
    %153 = arith.divf %151, %152 : vector<1x16xf32>
    %154 = arith.mulf %145, %126 : vector<1x16xf32>
    %155 = arith.mulf %139, %147 : vector<1x16xf32>
    %156 = arith.addf %154, %155 : vector<1x16xf32>
    %157 = math.tanh %156 : vector<1x16xf32>
    %158 = arith.mulf %153, %157 : vector<1x16xf32>
    %c4 = arith.constant 4 : index
    %c0_35 = arith.constant 0 : index
    %159 = vector.load %arg8[%c4, %c0_35] : memref<8x16xf32, #tpu.memory_space<vmem>>, vector<1x16xf32>
    tpu.vector_store %arg8[%c4, %c0_35], %158 {strides = array<i32>} : memref<8x16xf32, #tpu.memory_space<vmem>>, vector<1x16xf32>,
    %160 = vector.extract_strided_slice %6 {offsets = [5, 0], sizes = [1, 128], strides = [1, 1]} : vector<8x128xf32> to vector<1x128xf32>
    %161 = arith.truncf %158 : vector<1x16xf32> to vector<1x16xbf16>
    %cst_36 = arith.constant dense<0.000000e+00> : vector<1x128xf32>
    %162 = tpu.matmul %161, %7, %cst_36 {dimension_numbers = #tpu.dot_dimension_numbers<[1], [0], [0], [1], [0, 0, 1, 1], [], []>} : vector<1x16xbf16>, vector<16x128xbf16>, vector<1x128xf32> -> vector<1x128xf32>
    %163 = arith.addf %160, %162 : vector<1x128xf32>
    %164 = vector.extract_strided_slice %163 {offsets = [0, 0], sizes = [1, 16], strides = [1, 1]} : vector<1x128xf32> to vector<1x16xf32>
    %165 = arith.negf %164 : vector<1x16xf32>
    %166 = math.exp %165 : vector<1x16xf32>
    %cst_37 = arith.constant 1.000000e+00 : f32
    %167 = vector.broadcast %cst_37 : f32 to vector<1x16xf32>
    %168 = arith.addf %167, %166 : vector<1x16xf32>
    %169 = arith.divf %167, %168 : vector<1x16xf32>
    %170 = vector.extract_strided_slice %163 {offsets = [0, 16], sizes = [1, 16], strides = [1, 1]} : vector<1x128xf32> to vector<1x16xf32>
    %171 = arith.negf %170 : vector<1x16xf32>
    %172 = math.exp %171 : vector<1x16xf32>
    %cst_38 = arith.constant 1.000000e+00 : f32
    %173 = vector.broadcast %cst_38 : f32 to vector<1x16xf32>
    %174 = arith.addf %173, %172 : vector<1x16xf32>
    %175 = arith.divf %173, %174 : vector<1x16xf32>
    %176 = vector.extract_strided_slice %163 {offsets = [0, 32], sizes = [1, 16], strides = [1, 1]} : vector<1x128xf32> to vector<1x16xf32>
    %177 = math.tanh %176 : vector<1x16xf32>
    %178 = vector.extract_strided_slice %163 {offsets = [0, 48], sizes = [1, 16], strides = [1, 1]} : vector<1x128xf32> to vector<1x16xf32>
    %179 = arith.negf %178 : vector<1x16xf32>
    %180 = math.exp %179 : vector<1x16xf32>
    %cst_39 = arith.constant 1.000000e+00 : f32
    %181 = vector.broadcast %cst_39 : f32 to vector<1x16xf32>
    %182 = arith.addf %181, %180 : vector<1x16xf32>
    %183 = arith.divf %181, %182 : vector<1x16xf32>
    %184 = arith.mulf %175, %156 : vector<1x16xf32>
    %185 = arith.mulf %169, %177 : vector<1x16xf32>
    %186 = arith.addf %184, %185 : vector<1x16xf32>
    %187 = math.tanh %186 : vector<1x16xf32>
    %188 = arith.mulf %183, %187 : vector<1x16xf32>
    %c5 = arith.constant 5 : index
    %c0_40 = arith.constant 0 : index
    %189 = vector.load %arg8[%c5, %c0_40] : memref<8x16xf32, #tpu.memory_space<vmem>>, vector<1x16xf32>
    tpu.vector_store %arg8[%c5, %c0_40], %188 {strides = array<i32>} : memref<8x16xf32, #tpu.memory_space<vmem>>, vector<1x16xf32>,
    %190 = vector.extract_strided_slice %6 {offsets = [6, 0], sizes = [1, 128], strides = [1, 1]} : vector<8x128xf32> to vector<1x128xf32>
    %191 = arith.truncf %188 : vector<1x16xf32> to vector<1x16xbf16>
    %cst_41 = arith.constant dense<0.000000e+00> : vector<1x128xf32>
    %192 = tpu.matmul %191, %7, %cst_41 {dimension_numbers = #tpu.dot_dimension_numbers<[1], [0], [0], [1], [0, 0, 1, 1], [], []>} : vector<1x16xbf16>, vector<16x128xbf16>, vector<1x128xf32> -> vector<1x128xf32>
    %193 = arith.addf %190, %192 : vector<1x128xf32>
    %194 = vector.extract_strided_slice %193 {offsets = [0, 0], sizes = [1, 16], strides = [1, 1]} : vector<1x128xf32> to vector<1x16xf32>
    %195 = arith.negf %194 : vector<1x16xf32>
    %196 = math.exp %195 : vector<1x16xf32>
    %cst_42 = arith.constant 1.000000e+00 : f32
    %197 = vector.broadcast %cst_42 : f32 to vector<1x16xf32>
    %198 = arith.addf %197, %196 : vector<1x16xf32>
    %199 = arith.divf %197, %198 : vector<1x16xf32>
    %200 = vector.extract_strided_slice %193 {offsets = [0, 16], sizes = [1, 16], strides = [1, 1]} : vector<1x128xf32> to vector<1x16xf32>
    %201 = arith.negf %200 : vector<1x16xf32>
    %202 = math.exp %201 : vector<1x16xf32>
    %cst_43 = arith.constant 1.000000e+00 : f32
    %203 = vector.broadcast %cst_43 : f32 to vector<1x16xf32>
    %204 = arith.addf %203, %202 : vector<1x16xf32>
    %205 = arith.divf %203, %204 : vector<1x16xf32>
    %206 = vector.extract_strided_slice %193 {offsets = [0, 32], sizes = [1, 16], strides = [1, 1]} : vector<1x128xf32> to vector<1x16xf32>
    %207 = math.tanh %206 : vector<1x16xf32>
    %208 = vector.extract_strided_slice %193 {offsets = [0, 48], sizes = [1, 16], strides = [1, 1]} : vector<1x128xf32> to vector<1x16xf32>
    %209 = arith.negf %208 : vector<1x16xf32>
    %210 = math.exp %209 : vector<1x16xf32>
    %cst_44 = arith.constant 1.000000e+00 : f32
    %211 = vector.broadcast %cst_44 : f32 to vector<1x16xf32>
    %212 = arith.addf %211, %210 : vector<1x16xf32>
    %213 = arith.divf %211, %212 : vector<1x16xf32>
    %214 = arith.mulf %205, %186 : vector<1x16xf32>
    %215 = arith.mulf %199, %207 : vector<1x16xf32>
    %216 = arith.addf %214, %215 : vector<1x16xf32>
    %217 = math.tanh %216 : vector<1x16xf32>
    %218 = arith.mulf %213, %217 : vector<1x16xf32>
    %c6 = arith.constant 6 : index
    %c0_45 = arith.constant 0 : index
    %219 = vector.load %arg8[%c6, %c0_45] : memref<8x16xf32, #tpu.memory_space<vmem>>, vector<1x16xf32>
    tpu.vector_store %arg8[%c6, %c0_45], %218 {strides = array<i32>} : memref<8x16xf32, #tpu.memory_space<vmem>>, vector<1x16xf32>,
    %220 = vector.extract_strided_slice %6 {offsets = [7, 0], sizes = [1, 128], strides = [1, 1]} : vector<8x128xf32> to vector<1x128xf32>
    %221 = arith.truncf %218 : vector<1x16xf32> to vector<1x16xbf16>
    %cst_46 = arith.constant dense<0.000000e+00> : vector<1x128xf32>
    %222 = tpu.matmul %221, %7, %cst_46 {dimension_numbers = #tpu.dot_dimension_numbers<[1], [0], [0], [1], [0, 0, 1, 1], [], []>} : vector<1x16xbf16>, vector<16x128xbf16>, vector<1x128xf32> -> vector<1x128xf32>
    %223 = arith.addf %220, %222 : vector<1x128xf32>
    %224 = vector.extract_strided_slice %223 {offsets = [0, 0], sizes = [1, 16], strides = [1, 1]} : vector<1x128xf32> to vector<1x16xf32>
    %225 = arith.negf %224 : vector<1x16xf32>
    %226 = math.exp %225 : vector<1x16xf32>
    %cst_47 = arith.constant 1.000000e+00 : f32
    %227 = vector.broadcast %cst_47 : f32 to vector<1x16xf32>
    %228 = arith.addf %227, %226 : vector<1x16xf32>
    %229 = arith.divf %227, %228 : vector<1x16xf32>
    %230 = vector.extract_strided_slice %223 {offsets = [0, 16], sizes = [1, 16], strides = [1, 1]} : vector<1x128xf32> to vector<1x16xf32>
    %231 = arith.negf %230 : vector<1x16xf32>
    %232 = math.exp %231 : vector<1x16xf32>
    %cst_48 = arith.constant 1.000000e+00 : f32
    %233 = vector.broadcast %cst_48 : f32 to vector<1x16xf32>
    %234 = arith.addf %233, %232 : vector<1x16xf32>
    %235 = arith.divf %233, %234 : vector<1x16xf32>
    %236 = vector.extract_strided_slice %223 {offsets = [0, 32], sizes = [1, 16], strides = [1, 1]} : vector<1x128xf32> to vector<1x16xf32>
    %237 = math.tanh %236 : vector<1x16xf32>
    %238 = vector.extract_strided_slice %223 {offsets = [0, 48], sizes = [1, 16], strides = [1, 1]} : vector<1x128xf32> to vector<1x16xf32>
    %239 = arith.negf %238 : vector<1x16xf32>
    %240 = math.exp %239 : vector<1x16xf32>
    %cst_49 = arith.constant 1.000000e+00 : f32
    %241 = vector.broadcast %cst_49 : f32 to vector<1x16xf32>
    %242 = arith.addf %241, %240 : vector<1x16xf32>
    %243 = arith.divf %241, %242 : vector<1x16xf32>
    %244 = arith.mulf %235, %216 : vector<1x16xf32>
    %245 = arith.mulf %229, %237 : vector<1x16xf32>
    %246 = arith.addf %244, %245 : vector<1x16xf32>
    %247 = math.tanh %246 : vector<1x16xf32>
    %248 = arith.mulf %243, %247 : vector<1x16xf32>
    %c7 = arith.constant 7 : index
    %c0_50 = arith.constant 0 : index
    %249 = vector.load %arg8[%c7, %c0_50] : memref<8x16xf32, #tpu.memory_space<vmem>>, vector<1x16xf32>
    tpu.vector_store %arg8[%c7, %c0_50], %248 {strides = array<i32>} : memref<8x16xf32, #tpu.memory_space<vmem>>, vector<1x16xf32>,
    %c0_51 = arith.constant 0 : index
    %c0_52 = arith.constant 0 : index
    %250 = vector.load %arg8[%c0_51, %c0_52] : memref<8x16xf32, #tpu.memory_space<vmem>>, vector<8x16xf32>
    %251 = tpu.transpose %250, [1, 0] : vector<8x16xf32> -> vector<16x8xf32>
    %252 = arith.truncf %251 : vector<16x8xf32> to vector<16x8xbf16>
    %c0_53 = arith.constant 0 : index
    %c0_54 = arith.constant 0 : index
    %253 = vector.load %arg5[%c0_53, %c0_54] : memref<8x128xbf16, #tpu.memory_space<vmem>>, vector<8x128xbf16>
    %cst_55 = arith.constant dense<0.000000e+00> : vector<16x128xf32>
    %254 = tpu.matmul %252, %253, %cst_55 {dimension_numbers = #tpu.dot_dimension_numbers<[1], [0], [0], [1], [0, 0, 1, 1], [], []>} : vector<16x8xbf16>, vector<8x128xbf16>, vector<16x128xf32> -> vector<16x128xf32>
    %c0_56 = arith.constant 0 : index
    %c0_57 = arith.constant 0 : index
    %255 = vector.load %arg6[%c0_56, %c0_57] : memref<1x128xf32, #tpu.memory_space<vmem>>, vector<1x128xf32>
    %256 = vector.broadcast %255 : vector<1x128xf32> to vector<16x128xf32>
    %257 = arith.addf %254, %256 : vector<16x128xf32>
    %c0_58 = arith.constant 0 : index
    %c0_59 = arith.constant 0 : index
    %c0_60 = arith.constant 0 : index
    %258 = vector.load %arg7[%c0_58, %c0_59, %c0_60] : memref<1x16x128xf32, #tpu.memory_space<vmem>>, vector<1x16x128xf32>
    %259 = vector.shape_cast %258 : vector<1x16x128xf32> to vector<16x128xf32>
    %260 = vector.shape_cast %257 : vector<16x128xf32> to vector<1x16x128xf32>
    tpu.vector_store %arg7[%c0_58, %c0_59, %c0_60], %260 {strides = array<i32>} : memref<1x16x128xf32, #tpu.memory_space<vmem>>, vector<1x16x128xf32>,
    return
  }
  func.func @transform_0(%arg0: i32) -> (i32, i32, i32) {
    %c0_i32 = arith.constant 0 : i32
    %c0_i32_0 = arith.constant 0 : i32
    %c0_i32_1 = arith.constant 0 : i32
    return %arg0, %c0_i32, %c0_i32_0 : i32, i32, i32
  }
  func.func @transform_1(%arg0: i32) -> (i32, i32) {
    %c0_i32 = arith.constant 0 : i32
    %c0_i32_0 = arith.constant 0 : i32
    %c0_i32_1 = arith.constant 0 : i32
    return %c0_i32, %c0_i32_0 : i32, i32
  }
  func.func @transform_2(%arg0: i32) -> (i32, i32) {
    %c0_i32 = arith.constant 0 : i32
    %c0_i32_0 = arith.constant 0 : i32
    %c0_i32_1 = arith.constant 0 : i32
    return %c0_i32, %c0_i32_0 : i32, i32
  }
  func.func @transform_3(%arg0: i32) -> (i32, i32) {
    %c0_i32 = arith.constant 0 : i32
    %c0_i32_0 = arith.constant 0 : i32
    %c0_i32_1 = arith.constant 0 : i32
    return %c0_i32, %c0_i32_0 : i32, i32
  }
  func.func @transform_4(%arg0: i32) -> (i32, i32) {
    %c0_i32 = arith.constant 0 : i32
    %c0_i32_0 = arith.constant 0 : i32
    %c0_i32_1 = arith.constant 0 : i32
    return %c0_i32, %c0_i32_0 : i32, i32
  }
  func.func @transform_5(%arg0: i32) -> (i32, i32) {
    %c0_i32 = arith.constant 0 : i32
    %c0_i32_0 = arith.constant 0 : i32
    %c0_i32_1 = arith.constant 0 : i32
    return %c0_i32, %c0_i32_0 : i32, i32
  }
  func.func @transform_6(%arg0: i32) -> (i32, i32, i32) {
    %c0_i32 = arith.constant 0 : i32
    %c0_i32_0 = arith.constant 0 : i32
    %c0_i32_1 = arith.constant 0 : i32
    return %arg0, %c0_i32, %c0_i32_0 : i32, i32, i32
  }
}

</mosaic_0001>

<bundles_post_ra>
// kernel: tpu_custom_call.1
= control target key start
LH: loop header
LB: loop body
LE: loop exit
PB: predicated region body
PF: predicated region fallthrough
CT: control target
= control target key end

     0   :  { %s2014_s0 = inlined_call_operand.hbm [shape: bf16[4,8,16], index: 0, kind: input, shape index: {}]   ;;  %s2015_s1 = inlined_call_operand.hbm [shape: bf16[16,128], index: 1, kind: input, shape index: {}]   ;;  %s2016_s2 = inlined_call_operand.vmem [shape: f32[1,128], index: 2, kind: input, shape index: {}]   ;;  %s2017_s3 = inlined_call_operand.hbm [shape: bf16[16,128], index: 3, kind: input, shape index: {}]   ;;  %s2018_s4 = inlined_call_operand.vmem [shape: bf16[8,128], index: 4, kind: input, shape index: {}]   ;;  %s2019_s5 = inlined_call_operand.vmem [shape: f32[1,128], index: 5, kind: input, shape index: {}]   ;;  %s2020_s6 = inlined_call_operand.hbm [shape: f32[4,16,128], index: 6, kind: output, shape index: {}]  }
   0x1   :  { %2025 = sst [smem:[#allocation13_spill]] %s2015_s1 }
   0x2   :  { %11 = vsyncpa [#allocation4], 0 }
   0x3   :  { %13 = vsyncpa [#allocation4 + $0x1], 0 }
   0x4   :  { %14 = vsyncpa [#allocation7], 0 }
   0x5   :  { %15 = vsyncpa [#allocation5], 0 }
   0x6   :  { %17 = vsyncpa [#allocation5 + $0x1], 0  ;;  %s1700_s21 = smov 0   ;;  %s1702_s22 = smov 0  }
   0x7   :  { %s1704_s23 = smov 0   ;;  %s1706_s24 = smov 0  }
   0x8 LB: > { %s1721_s25 = sadd.s32 4294967295, %s1648_s24   ;;  %s1237_s26 = sadd.s32 4294967294, %s1648_s24   ;;  %s1648_s24 = sphi %s1706_s24, %s2043_s24   ;;  %s1644_s23 = sphi %s1704_s23, %s2042_s23   ;;  %s1640_s22 = sphi %s1702_s22, %s2041_s22   ;;  %s1636_s21 = sphi %s1700_s21, %s2040_s21  }
   0x9   : > { %p43_p0 = scmp.ne.s32.totalorder %s1640_s22, %s1636_s21  ;;  %p2021_p1 = scmp.eq.s32.totalorder %s1721_s25, 0 }
   0xa   : > { %p178_p3 = scmp.eq.s32.totalorder %s1237_s26, 3  ;;  %p1238_p5 = scmp.ge.s32.totalorder %s1648_s24, 1 }
   0xb   : > { %p1730_p4 = por %p2021_p1, %p43_p0  ;;  %p185_p7 = scmp.lt.s32.totalorder %s1648_s24, 5 }
   0xc   : > { %p1735_p6 = por %p178_p3, %p43_p0  ;;  %s1650_s30 = smov [#allocation6]  }
   0xd   : > { %s2026_s27 = scalar_select %p1730_p4, 1, 0 }
   0xe   : > { %s2027_s28 = scalar_select %p1735_p6, 1, 0 }
   0xf   : > { %p1740_p8 = pnand %p1238_p5, %p185_p7  ;;  %s197_s7 = sshll.u32 %s1650_s30, 4  ;;  %s198_s7 = int_to_ptr.vmem [resolvable:$true] %s197_s7 }
  0x10   : > { %s1651_s9 = smov [#allocation8]   ;;  %s1511_s11 = scalar_lea.vmem %s198_s7, 128 }
  0x11   : > { %s2028_s29 = scalar_select %p1740_p8, 1, 0 }
  0x12   : > { %p1368_p9 = pneg %p1740_p8  ;;  %s213_s10 = sshll.u32 %s1651_s9, 4  ;;  %s214_s10 = int_to_ptr.vmem [resolvable:$true] %s213_s10 }
  0x13   : > { %p1512_p12 = scmp.ne.s32.totalorder %s198_s7, %s1511_s11  ;;  %p1519_p3 = scmp.lt.s32.totalorder %s198_s7, %s198_s7 }
  0x14   : > { %p1748_p10 = pnand %p1368_p9, %p2021_p1  ;;  %p1520_p5 = scmp.lt.s32.totalorder %s1511_s11, %s1511_s11 }
  0x16   : > { %p1502_p11 = pneg %p1748_p10  ;;  %p1521_p7 = por %p1520_p5, %p1519_p3 }
  0x18   : > { %p1514_p13 = pnand %p1512_p12, %p1502_p11 }
  0x1a   : > { %p1515_p0 = pneg %p1514_p13 }
  0x1c   : > { %p1522_p9 = pnand %p1521_p7, %p1515_p0 }
  0x1e   : > { %1525 = shalt.err (!%p1522_p9)
}
  0x1f   : > { %s1652_s12 = smov 64   ;;  %s1653_s13 = smov 4  }
  0x20   : > { %s2030_s1 = sld [smem:[#allocation13_spill]]  ;;  %s1537_s16 = scalar_lea.vmem %s214_s10, 128 }
  0x21   : > { %p1538_p1 = scmp.ne.s32.totalorder %s214_s10, %s1537_s16  ;;  %p1545_p2 = scmp.lt.s32.totalorder %s214_s10, %s214_s10 }
  0x22   : > { %p1546_p6 = scmp.lt.s32.totalorder %s1537_s16, %s1537_s16 }
  0x23   : > { %p1540_p12 = pnand %p1538_p1, %p1502_p11 }
  0x24   : > { %p1547_p3 = por %p1546_p6, %p1545_p2 }
  0x25   : > { %p1541_p13 = pneg %p1540_p12 }
  0x26   : > { %1371 = dma.hbm_to_vmem [thread:$0]  (!%p1748_p10), %s2030_s1, 128, %s198_s7, [#allocation7], %s1652_s12, %s1652_s12, %s1653_s13  }
  0x27   : > { %p1548_p0 = pnand %p1547_p3, %p1541_p13 }
  0x29   : > { %1551 = shalt.err (!%p1548_p0)
}
  0x2a   : > { %1374 = dma.hbm_to_vmem [thread:$0]  (!%p1748_p10), %s2017_s3, 128, %s214_s10, [#allocation7], %s1652_s12, %s1652_s12, %s1653_s13  }
  0x2b   : > { %s1771_s19 = sadd.s32 1, %s1648_s24   ;;  %s30_s20 = sadd.s32 1, %s1644_s23 }
  0x2c   : > { %s27_s26 = ssub.s32 %s1648_s24, %s1771_s19  ;;  %p37_p1 = scmp.ne.s32.totalorder %s1644_s23, %s1640_s22 }
  0x2d   : > { %p28_p2 = scmp.eq.s32.totalorder %s27_s26, 0  ;;  %p38_p6 = scmp.eq.s32.totalorder %s1648_s24, 0 }
  0x2e   : > { %p2031_p11 = scmp.eq.s32.totalorder %s1721_s25, 3  ;;  %p1385_p7 = scmp.lt.s32.totalorder %s1648_s24, 4 }
  0x2f   : > { %s1787_s7 = scalar_select %p28_p2, %s1644_s23, %s30_s20  }
  0x30   : > { %p1781_p5 = por %p2031_p11, %p37_p1  ;;  %p39_p9 = por %p38_p6, %p37_p1 }
  0x31   : > { %s233_s8 = sand.u32 1, %s1644_s23   ;;  %s1243_s10 = sshll.u32 %s1648_s24, 6 }
  0x32   : > { %s2032_s30 = scalar_select %p1781_p5, 1, 0 }
  0x33   : > { %s1242_s9 = sshll.u32 %s233_s8, 2  ;;  %s1794_s13 = scalar_lea.hbm %s2014_s0, %s1243_s10 }
  0x34   : > { %s237_s14 = scalar_lea.vmem [#allocation3], %s1242_s9  ;;  %p1796_p10 = pnand %p1385_p7, %p39_p9 }
  0x35   : > { %s244_s15 = sshll.u32 %s237_s14, 4  ;;  %s234_s17 = scalar_lea.sflag [#allocation4], %s233_s8  ;;  %s245_s15 = int_to_ptr.vmem [resolvable:$true] %s244_s15 }
  0x36   : > { %s1552_s18 = scalar_lea.hbm %s1794_s13, 64  ;;  %p1554_p13 = pneg %p1796_p10 }
  0x37   : > { %p1553_p12 = scmp.ne.s32.totalorder %s1794_s13, %s1552_s18  ;;  %s1557_s10 = scalar_lea.hbm %s2014_s0, 256 }
  0x38   : > { %p1558_p1 = scmp.lt.s32.totalorder %s1794_s13, %s2014_s0  ;;  %p1559_p2 = scmp.lt.s32.totalorder %s1557_s10, %s1552_s18 }
  0x39   : > { %p1555_p3 = pnand %p1554_p13, %p1553_p12 }
  0x3a   : > { %p1560_p6 = por %p1559_p2, %p1558_p1 }
  0x3b   : > { %p1556_p0 = pneg %p1555_p3 }
  0x3d   : > { %p1561_p11 = pnand %p1560_p6, %p1556_p0 }
  0x3f   : > { %1564 = shalt.err (!%p1561_p11)
}
  0x40   : > { %s1565_s12 = scalar_lea.vmem %s245_s15, 64  ;;  %s1654_s8 = smov [#allocation3]  }
  0x41   : > { %p1566_p7 = scmp.ne.s32.totalorder %s245_s15, %s1565_s12  ;;  %s1570_s14 = sshll.u32 %s1654_s8, 4  ;;  %s1571_s14 = int_to_ptr.vmem [resolvable:$false] %s1570_s14 }
  0x42   : > { %s1572_s1 = scalar_lea.vmem %s1571_s14, 128  ;;  %p1573_p12 = scmp.lt.s32.totalorder %s245_s15, %s1571_s14 }
  0x43   : > { %p1568_p9 = pnand %p1566_p7, %p1554_p13  ;;  %p1574_p3 = scmp.lt.s32.totalorder %s1572_s1, %s1565_s12 }
  0x45   : > { %p1569_p5 = pneg %p1568_p9  ;;  %p1575_p4 = por %p1574_p3, %p1573_p12 }
  0x47   : > { %p1576_p8 = pnand %p1575_p4, %p1569_p5 }
  0x49   : > { %1579 = shalt.err (!%p1576_p8)
}
  0x4a   : > { %1378 = dma.hbm_to_vmem [thread:$0]  (!%p1796_p10), %s1794_s13, 64, %s245_s15, %s234_s17  }
  0x4b   : > { %p2034_p0 = scmp.ne.s32.totalorder %s2028_s29, 0 }
  0x4c   : > { %s1817_s18 = sand.u32 (!%p2034_p0), 1, %s1640_s22   ;;  %p2035_p13 = scmp.ne.s32.totalorder (!%p2034_p0), %s2026_s27, 0 }
  0x4d   : > { %253 = sbr.rel (%p2034_p0) target bundleno = 6002 (0x1772), region = 44  ;;  %s1245_s20 = sshll.u32 (!%p2034_p0), %s1817_s18, 2 }
  0x4e   : > { %s256_s26 = scalar_lea.sflag (!%p2034_p0), [#allocation4], %s1817_s18  ;;  %s259_s10 = scalar_lea.vmem (!%p2034_p0), [#allocation3], %s1245_s20 }
  0x52   : > { %1623 = dma.done.wait (%p2035_p13), %s256_s26, 64  }
  0x53   : > { %1625 = vsyncadd (%p2035_p13), %s256_s26, 4294967232  ;;  %p2036_p4 = scmp.eq.s32.totalorder %s1721_s25, 0 }
  0x55   : > { %1627 = dma.done.wait (%p2036_p4), [#allocation7], 256   ;;  %p2037_p8 = pmov %p2036_p4 }
  0x56   : > { %v1655_v0 = vmov 0.0   ;;  %vm1656_vm0 = vmmov 0   ;;  %v1434_v1 = vld [vmem:[#allocation6] sm:$0xff]   ;;  %v1835_v2 = vld [vmem:[#allocation8] sm:$0xff]   ;;  %v297_v3 = vld [vmem:[%s259_s10] sm:$0xf] }
  0x57   : > { %1629 = vsyncadd (%p2037_p8), [#allocation7], 4294967040  ;;  %1296 = vmatprep.subr.bf16.mxu0 %v1655_v0  ;;  %1302 = vmatprep.subr.bf16.mxu1 %v1655_v0  ;;  %vm313_vm1 = vcmask 130048   ;;  %v1657_v4 = vmov 0   ;;  %v1249_v5 = vld [vmem:[%s2016_s2] ss:$0 sm:$0xff] }
  0x58   : > { %1298 = vmatprep.mubr.msk.bf16.mxu0 %vm1656_vm0, %v1655_v0  ;;  %1304 = vmatprep.mubr.msk.bf16.mxu1 %vm1656_vm0, %v1655_v0  ;;  %s1658_s29 = smov 96   ;;  %s1659_s13 = smov 16   ;;  %vm437_vm2 = vcmask 122880   ;;  %vm607_vm3 = vcmask 124930   ;;  %vm779_vm4 = vcmask 126980   ;;  %vm951_vm5 = vcmask 129030  }
  0x59   : > { %1297 = vmatpush3.bf16.msra.mxu0 %v1434_v1  ;;  %1303 = vmatpush3.bf16.msra.mxu1 %v1835_v2  ;;  %s1660_s15 = smov 32   ;;  %s1661_s16 = smov 80   ;;  %vm1084_vm6 = vcmask 1043456   ;;  %vm521_vm7 = vcmask 123905   ;;  %vm692_vm8 = vcmask 125955   ;;  %vm864_vm9 = vcmask 128005  }
  0x5a   : > { %1308 = vmatprep.subr.bf16.mxu0 %v1655_v0  ;;  %1314 = vmatprep.subr.bf16.mxu1 %v1655_v0  ;;  %vm1036_vm10 = vcmask 130055   ;;  %vm1080_vm11 = vcmask 64512   ;;  %s1248_s9 = sshll.u32 %s1817_s18, 4  ;;  %s1275_s26 = sshll.u32 %s1721_s25, 8 }
  0x5b   : > { %s295_s14 = scalar_lea.vmem [#allocation9], %s1248_s9  ;;  %s1972_s27 = scalar_lea.hbm %s2020_s6, %s1275_s26 }
  0x5c   : > { %1299 = vmatmul.mubr.msk.bf16.vlgmr.msra.gmra.mxu0 %vm313_vm1, %v297_v3  ;;  %1305 = vmatmul.mubr.bf16.vlgmr.msra.gmra.mxu1 %v1657_v4  ;;  %s1145_s20 = sshll.u32 %s295_s14, 4  ;;  %p2038_p10 = scmp.ne.s32.totalorder %s2032_s30, 0  ;;  %s1967_s20 = int_to_ptr.vmem [resolvable:$true] %s1145_s20 }
  0x5d   : > { %1309 = vmatpush3.bf16.msra.mxu0 %v1835_v2  ;;  %1310 = vmatprep.mubr.msk.bf16.mxu0 %vm1656_vm0, %v1655_v0  ;;  %s1662_s25 = smov [#allocation9]  }
  0x5e   : > { %1315 = vmatpush3.bf16.msra.mxu1 %v1835_v2  ;;  %1316 = vmatprep.mubr.msk.bf16.mxu1 %vm1656_vm0, %v1655_v0 }
  0x5f   : > { %1320 = vmatprep.subr.bf16.mxu0 %v1655_v0  ;;  %1326 = vmatprep.subr.bf16.mxu1 %v1655_v0 }
 0x11c   : > { %v351_v6 = vpop.f32.mrf.mxu0  ;;  %v402_v8 = vpop.f32.mrf.mxu1 }
 0x11d   : > { %v1852_v7 = vadd.f32 %v1249_v5, %v351_v6 }
 0x11e   : > { %v1300_v9 = vpop.f32.mrf.mxu0  ;;  %v1306_v11 = vpop.f32.mrf.mxu1 }
 0x11f   : > { %v408_v10 = vadd.f32 %v402_v8, %v1852_v7 }
 0x120   : > { %v354_v12 = vpop.f32.mrf.mxu0  ;;  %v405_v13 = vpop.f32.mrf.mxu1 }
 0x121   : > { %1436 = vtanh.f32 %v408_v10  ;;  %v1253_v17 = vmul.f32 -1.442695, %v408_v10 }
 0x122   : > { %v1301_v14 = vpop.f32.mrf.mxu0  ;;  %v1307_v15 = vpop.f32.mrf.mxu1 }
 0x123   : > { %1438 = vpow2.f32 %v1253_v17 }
 0x12e   : > { %v1437_v16 = vpop.eup %1436 }
 0x12f   : > { %418 = vrot.lane.b32.xlu0 %v1437_v16, %s1658_s29 }
 0x130   : > { %v1439_v18 = vpop.eup %1438 }
 0x131   : > { %v412_v19 = vadd.f32 1.0, %v1439_v18 }
 0x133   : > { %1440 = vrcp.f32 %v412_v19 }
 0x140   : > { %v1441_v20 = vpop.eup %1440 }
 0x141   : > { %v416_v23 = vmul.f32 0.0, %v1441_v20 }
 0x1a1   : > { %v419_v21 = vpop.permute.xlu0 %418 }
 0x1a2   : > { %v421_v22 = vmul.f32 %v1441_v20, %v419_v21 }
 0x1a4   : > { %423 = vrot.lane.b32.xlu0 %v421_v22, %s1659_s13 }
 0x216   : > { %v424_v24 = vpop.permute.xlu0 %423 }
 0x217   : > { %v426_v25 = vadd.f32 %v424_v24, %v416_v23 }
 0x219   : > { %1442 = vtanh.f32 %v426_v25  ;;  %v498_v44 = vrot.slane %v426_v25, 7 }
 0x226   : > { %v1443_v26 = vpop.eup %1442 }
 0x227   : > { %429 = vrot.lane.b32.xlu1 %v1443_v26, %s1660_s15 }
 0x299   : > { %v430_v27 = vpop.permute.xlu1 %429 }
 0x29a   : > { %v1858_v28 = vmul.f32 %v1441_v20, %v430_v27 }
 0x29c   : > { %v439_v29 = vpack.c.bf16 %v1858_v28, %v1858_v28 }
 0x29e   : > { %441 = vrot.lane.b32.xlu1 %v439_v29, %s1661_s16 }
 0x310   : > { %v442_v30 = vpop.permute.xlu1 %441 }
 0x311   : > { %1311 = vmatmul.mubr.msk.bf16.vlgmr.msra.gmra.mxu0 %vm313_vm1, %v442_v30 }
 0x312   : > { %1321 = vmatpush3.bf16.msra.mxu0 %v1835_v2  ;;  %1322 = vmatprep.mubr.msk.bf16.mxu0 %vm1656_vm0, %v1655_v0 }
 0x313   : > { %1332 = vmatprep.subr.bf16.mxu0 %v1655_v0 }
 0x3d1   : > { %v480_v31 = vpop.f32.mrf.mxu0 }
 0x3d2   : > { %v487_v32 = vrot.slane %v480_v31, 7 }
 0x3d3   : > { %v1312_v33 = vpop.f32.mrf.mxu0 }
 0x3d4   : > { %v489_v34 = vadd.f32 %v487_v32, %v1852_v7 }
 0x3d5   : > { %v483_v35 = vpop.f32.mrf.mxu0 }
 0x3d6   : > { %1444 = vtanh.f32 %v489_v34  ;;  %v1255_v38 = vmul.f32 -1.442695, %v489_v34 }
 0x3d7   : > { %v1313_v36 = vpop.f32.mrf.mxu0 }
 0x3d8   : > { %1446 = vpow2.f32 %v1255_v38 }
 0x3e3   : > { %v1445_v37 = vpop.eup %1444 }
 0x3e4   : > { %502 = vrot.lane.b32.xlu0 %v1445_v37, %s1658_s29 }
 0x3e5   : > { %v1447_v39 = vpop.eup %1446 }
 0x3e6   : > { %v493_v40 = vadd.f32 1.0, %v1447_v39 }
 0x3e8   : > { %1448 = vrcp.f32 %v493_v40 }
 0x3f5   : > { %v1449_v41 = vpop.eup %1448 }
 0x3f6   : > { %v500_v45 = vmul.f32 %v1449_v41, %v498_v44 }
 0x456   : > { %v503_v42 = vpop.permute.xlu0 %502 }
 0x457   : > { %v505_v43 = vmul.f32 %v1449_v41, %v503_v42 }
 0x459   : > { %507 = vrot.lane.b32.xlu1 %v505_v43, %s1659_s13 }
 0x4cb   : > { %v508_v46 = vpop.permute.xlu1 %507 }
 0x4cc   : > { %v510_v47 = vadd.f32 %v508_v46, %v500_v45 }
 0x4ce   : > { %1450 = vtanh.f32 %v510_v47  ;;  %v584_v5 = vrot.slane %v510_v47, 7 }
 0x4db   : > { %v1451_v48 = vpop.eup %1450 }
 0x4dc   : > { %513 = vrot.lane.b32.xlu0 %v1451_v48, %s1660_s15 }
 0x54e   : > { %v514_v49 = vpop.permute.xlu0 %513 }
 0x54f   : > { %v1872_v50 = vmul.f32 %v1449_v41, %v514_v49 }
 0x551   : > { %v523_v51 = vpack.c.bf16 %v1872_v50, %v1872_v50 }
 0x553   : > { %v525_v52 = vshrl.u32 %v523_v51, 16 }
 0x555   : > { %527 = vrot.lane.b32.xlu1 %v525_v52, %s1661_s16 }
 0x5c7   : > { %v528_v53 = vpop.permute.xlu1 %527 }
 0x5c8   : > { %1317 = vmatmul.mubr.msk.bf16.vlgmr.msra.gmra.mxu1 %vm313_vm1, %v528_v53 }
 0x5c9   : > { %1327 = vmatpush3.bf16.msra.mxu1 %v1835_v2  ;;  %1328 = vmatprep.mubr.msk.bf16.mxu1 %vm1656_vm0, %v1655_v0 }
 0x5ca   : > { %1338 = vmatprep.subr.bf16.mxu1 %v1655_v0 }
 0x688   : > { %v566_v54 = vpop.f32.mrf.mxu1 }
 0x689   : > { %v573_v55 = vrot.slane %v566_v54, 6 }
 0x68a   : > { %v1318_v56 = vpop.f32.mrf.mxu1 }
 0x68b   : > { %v575_v57 = vadd.f32 %v573_v55, %v1852_v7 }
 0x68c   : > { %v569_v58 = vpop.f32.mrf.mxu1 }
 0x68d   : > { %1452 = vtanh.f32 %v575_v57  ;;  %v1257_v61 = vmul.f32 -1.442695, %v575_v57 }
 0x68e   : > { %v1319_v59 = vpop.f32.mrf.mxu1 }
 0x68f   : > { %1454 = vpow2.f32 %v1257_v61 }
 0x69a   : > { %v1453_v60 = vpop.eup %1452 }
 0x69b   : > { %588 = vrot.lane.b32.xlu0 %v1453_v60, %s1658_s29 }
 0x69c   : > { %v1455_v62 = vpop.eup %1454 }
 0x69d   : > { %v579_v63 = vadd.f32 1.0, %v1455_v62 }
 0x69f   : > { %1456 = vrcp.f32 %v579_v63 }
 0x6ac   : > { %v1457_v1 = vpop.eup %1456 }
 0x6ad   : > { %v586_v6 = vmul.f32 %v1457_v1, %v584_v5 }
 0x70d   : > { %v589_v3 = vpop.permute.xlu0 %588 }
 0x70e   : > { %v591_v4 = vmul.f32 %v1457_v1, %v589_v3 }
 0x710   : > { %593 = vrot.lane.b32.xlu1 %v591_v4, %s1659_s13 }
 0x782   : > { %v594_v8 = vpop.permute.xlu1 %593 }
 0x783   : > { %v596_v9 = vadd.f32 %v594_v8, %v586_v6 }
 0x785   : > { %1458 = vtanh.f32 %v596_v9  ;;  %v669_v30 = vrot.slane %v596_v9, 7 }
 0x792   : > { %v1459_v10 = vpop.eup %1458 }
 0x793   : > { %599 = vrot.lane.b32.xlu0 %v1459_v10, %s1660_s15 }
 0x805   : > { %v600_v11 = vpop.permute.xlu0 %599 }
 0x806   : > { %v1886_v12 = vmul.f32 %v1457_v1, %v600_v11 }
 0x808   : > { %v609_v13 = vpack.c.bf16 %v1886_v12, %v1886_v12 }
 0x80a   : > { %v611_v14 = vrot.slane %v609_v13, 1 }
 0x80c   : > { %612 = vrot.lane.b32.xlu1 %v611_v14, %s1661_s16 }
 0x87e   : > { %v613_v15 = vpop.permute.xlu1 %612 }
 0x87f   : > { %1323 = vmatmul.mubr.msk.bf16.vlgmr.msra.gmra.mxu0 %vm313_vm1, %v613_v15 }
 0x880   : > { %1333 = vmatpush3.bf16.msra.mxu0 %v1835_v2  ;;  %1334 = vmatprep.mubr.msk.bf16.mxu0 %vm1656_vm0, %v1655_v0 }
 0x881   : > { %1344 = vmatprep.subr.bf16.mxu0 %v1655_v0 }
 0x93f   : > { %v651_v16 = vpop.f32.mrf.mxu0 }
 0x940   : > { %v658_v17 = vrot.slane %v651_v16, 5 }
 0x941   : > { %v1324_v18 = vpop.f32.mrf.mxu0 }
 0x942   : > { %v660_v19 = vadd.f32 %v658_v17, %v1852_v7 }
 0x943   : > { %v654_v20 = vpop.f32.mrf.mxu0 }
 0x944   : > { %1460 = vtanh.f32 %v660_v19  ;;  %v1259_v23 = vmul.f32 -1.442695, %v660_v19 }
 0x945   : > { %v1325_v21 = vpop.f32.mrf.mxu0 }
 0x946   : > { %1462 = vpow2.f32 %v1259_v23 }
 0x951   : > { %v1461_v22 = vpop.eup %1460 }
 0x952   : > { %673 = vrot.lane.b32.xlu0 %v1461_v22, %s1658_s29 }
 0x953   : > { %v1463_v24 = vpop.eup %1462 }
 0x954   : > { %v664_v25 = vadd.f32 1.0, %v1463_v24 }
 0x956   : > { %1464 = vrcp.f32 %v664_v25 }
 0x963   : > { %v1465_v26 = vpop.eup %1464 }
 0x964   : > { %v671_v31 = vmul.f32 %v1465_v26, %v669_v30 }
 0x9c4   : > { %v674_v27 = vpop.permute.xlu0 %673 }
 0x9c5   : > { %v676_v29 = vmul.f32 %v1465_v26, %v674_v27 }
 0x9c7   : > { %678 = vrot.lane.b32.xlu1 %v676_v29, %s1659_s13 }
 0xa39   : > { %v679_v32 = vpop.permute.xlu1 %678 }
 0xa3a   : > { %v681_v33 = vadd.f32 %v679_v32, %v671_v31 }
 0xa3c   : > { %1466 = vtanh.f32 %v681_v33  ;;  %v756_v55 = vrot.slane %v681_v33, 7 }
 0xa49   : > { %v1467_v34 = vpop.eup %1466 }
 0xa4a   : > { %684 = vrot.lane.b32.xlu0 %v1467_v34, %s1660_s15 }
 0xabc   : > { %v685_v35 = vpop.permute.xlu0 %684 }
 0xabd   : > { %v1900_v36 = vmul.f32 %v1465_v26, %v685_v35 }
 0xabf   : > { %v694_v37 = vpack.c.bf16 %v1900_v36, %v1900_v36 }
 0xac1   : > { %v696_v38 = vshrl.u32 %v694_v37, 16 }
 0xac3   : > { %v698_v39 = vrot.slane %v696_v38, 1 }
 0xac5   : > { %699 = vrot.lane.b32.xlu1 %v698_v39, %s1661_s16 }
 0xb37   : > { %v700_v40 = vpop.permute.xlu1 %699 }
 0xb38   : > { %1329 = vmatmul.mubr.msk.bf16.vlgmr.msra.gmra.mxu1 %vm313_vm1, %v700_v40 }
 0xb39   : > { %1339 = vmatpush3.bf16.msra.mxu1 %v1835_v2  ;;  %1340 = vmatprep.mubr.msk.bf16.mxu1 %vm1656_vm0, %v1655_v0 }
 0xb3a   : > { %1350 = vmatprep.subr.bf16.mxu1 %v1655_v0 }
 0xbf8   : > { %v738_v41 = vpop.f32.mrf.mxu1 }
 0xbf9   : > { %v745_v42 = vrot.slane %v738_v41, 4 }
 0xbfa   : > { %v1330_v43 = vpop.f32.mrf.mxu1 }
 0xbfb   : > { %v747_v44 = vadd.f32 %v745_v42, %v1852_v7 }
 0xbfc   : > { %v741_v45 = vpop.f32.mrf.mxu1 }
 0xbfd   : > { %1468 = vtanh.f32 %v747_v44  ;;  %v1261_v48 = vmul.f32 -1.442695, %v747_v44 }
 0xbfe   : > { %v1331_v46 = vpop.f32.mrf.mxu1 }
 0xbff   : > { %1470 = vpow2.f32 %v1261_v48 }
 0xc0a   : > { %v1469_v47 = vpop.eup %1468 }
 0xc0b   : > { %760 = vrot.lane.b32.xlu0 %v1469_v47, %s1658_s29 }
 0xc0c   : > { %v1471_v49 = vpop.eup %1470 }
 0xc0d   : > { %v751_v51 = vadd.f32 1.0, %v1471_v49 }
 0xc0f   : > { %1472 = vrcp.f32 %v751_v51 }
 0xc1c   : > { %v1473_v52 = vpop.eup %1472 }
 0xc1d   : > { %v758_v56 = vmul.f32 %v1473_v52, %v756_v55 }
 0xc7d   : > { %v761_v53 = vpop.permute.xlu0 %760 }
 0xc7e   : > { %v763_v54 = vmul.f32 %v1473_v52, %v761_v53 }
 0xc80   : > { %765 = vrot.lane.b32.xlu1 %v763_v54, %s1659_s13 }
 0xcf2   : > { %v766_v57 = vpop.permute.xlu1 %765 }
 0xcf3   : > { %v768_v58 = vadd.f32 %v766_v57, %v758_v56 }
 0xcf5   : > { %1474 = vtanh.f32 %v768_v58  ;;  %v841_v17 = vrot.slane %v768_v58, 7 }
 0xd02   : > { %v1475_v59 = vpop.eup %1474 }
 0xd03   : > { %771 = vrot.lane.b32.xlu0 %v1475_v59, %s1660_s15 }
 0xd75   : > { %v772_v60 = vpop.permute.xlu0 %771 }
 0xd76   : > { %v1914_v61 = vmul.f32 %v1473_v52, %v772_v60 }
 0xd78   : > { %v781_v62 = vpack.c.bf16 %v1914_v61, %v1914_v61 }
 0xd7a   : > { %v783_v63 = vrot.slane %v781_v62, 2 }
 0xd7c   : > { %784 = vrot.lane.b32.xlu1 %v783_v63, %s1661_s16 }
 0xdee   : > { %v785_v1 = vpop.permute.xlu1 %784 }
 0xdef   : > { %1335 = vmatmul.mubr.msk.bf16.vlgmr.msra.gmra.mxu0 %vm313_vm1, %v785_v1 }
 0xdf0   : > { %1345 = vmatpush3.bf16.msra.mxu0 %v1835_v2  ;;  %1346 = vmatprep.mubr.msk.bf16.mxu0 %vm1656_vm0, %v1655_v0 }
 0xeaf   : > { %v823_v3 = vpop.f32.mrf.mxu0 }
 0xeb0   : > { %v830_v4 = vrot.slane %v823_v3, 3 }
 0xeb1   : > { %v1336_v5 = vpop.f32.mrf.mxu0 }
 0xeb2   : > { %v832_v6 = vadd.f32 %v830_v4, %v1852_v7 }
 0xeb3   : > { %v826_v8 = vpop.f32.mrf.mxu0 }
 0xeb4   : > { %1476 = vtanh.f32 %v832_v6  ;;  %v1263_v11 = vmul.f32 -1.442695, %v832_v6 }
 0xeb5   : > { %v1337_v9 = vpop.f32.mrf.mxu0 }
 0xeb6   : > { %1478 = vpow2.f32 %v1263_v11 }
 0xec1   : > { %v1477_v10 = vpop.eup %1476 }
 0xec2   : > { %845 = vrot.lane.b32.xlu0 %v1477_v10, %s1658_s29 }
 0xec3   : > { %v1479_v13 = vpop.eup %1478 }
 0xec4   : > { %v836_v14 = vadd.f32 1.0, %v1479_v13 }
 0xec6   : > { %1480 = vrcp.f32 %v836_v14 }
 0xed3   : > { %v1481_v2 = vpop.eup %1480 }
 0xed4   : > { %v843_v18 = vmul.f32 %v1481_v2, %v841_v17 }
 0xf34   : > { %v846_v15 = vpop.permute.xlu0 %845 }
 0xf35   : > { %v848_v16 = vmul.f32 %v1481_v2, %v846_v15 }
 0xf37   : > { %850 = vrot.lane.b32.xlu1 %v848_v16, %s1659_s13 }
 0xfa9   : > { %v851_v19 = vpop.permute.xlu1 %850 }
 0xfaa   : > { %v853_v20 = vadd.f32 %v851_v19, %v843_v18 }
 0xfac   : > { %1482 = vtanh.f32 %v853_v20 }
 0xfb9   : > { %v1483_v21 = vpop.eup %1482 }
 0xfba   : > { %856 = vrot.lane.b32.xlu0 %v1483_v21, %s1660_s15  ;;  %v1268_v21 = vld [vmem:[%s2019_s5] ss:$0 sm:$0xff] }
0x102c   : > { %v857_v22 = vpop.permute.xlu0 %856 }
0x102d   : > { %v1927_v23 = vmul.f32 %v1481_v2, %v857_v22 }
0x102f   : > { %v866_v24 = vpack.c.bf16 %v1927_v23, %v1927_v23 }
0x1031   : > { %v868_v25 = vshrl.u32 %v866_v24, 16 }
0x1033   : > { %v870_v26 = vrot.slane %v868_v25, 2 }
0x1035   : > { %871 = vrot.lane.b32.xlu1 %v870_v26, %s1661_s16 }
0x10a7   : > { %v872_v27 = vpop.permute.xlu1 %871 }
0x10a8   : > { %1341 = vmatmul.mubr.msk.bf16.vlgmr.msra.gmra.mxu1 %vm313_vm1, %v872_v27 }
0x10a9   : > { %1352 = vmatprep.mubr.msk.bf16.mxu1 %vm1656_vm0, %v1655_v0  ;;  %v928_v0 = vrot.slane %v853_v20, 7 }
0x1168   : > { %v910_v29 = vpop.f32.mrf.mxu1 }
0x1169   : > { %v917_v30 = vrot.slane %v910_v29, 2 }
0x116a   : > { %v1342_v31 = vpop.f32.mrf.mxu1 }
0x116b   : > { %v919_v32 = vadd.f32 %v917_v30, %v1852_v7 }
0x116c   : > { %v913_v33 = vpop.f32.mrf.mxu1 }
0x116d   : > { %1484 = vtanh.f32 %v919_v32  ;;  %v1265_v37 = vmul.f32 -1.442695, %v919_v32 }
0x116e   : > { %v1343_v34 = vpop.f32.mrf.mxu1 }
0x116f   : > { %1486 = vpow2.f32 %v1265_v37 }
0x117a   : > { %v1485_v35 = vpop.eup %1484 }
0x117b   : > { %932 = vrot.lane.b32.xlu0 %v1485_v35, %s1658_s29 }
0x117c   : > { %v1487_v38 = vpop.eup %1486 }
0x117d   : > { %v923_v39 = vadd.f32 1.0, %v1487_v38 }
0x117f   : > { %1488 = vrcp.f32 %v923_v39 }
0x118c   : > { %v1489_v40 = vpop.eup %1488 }
0x118d   : > { %v930_v43 = vmul.f32 %v1489_v40, %v928_v0 }
0x11ed   : > { %v933_v41 = vpop.permute.xlu0 %932 }
0x11ee   : > { %v935_v42 = vmul.f32 %v1489_v40, %v933_v41 }
0x11f0   : > { %937 = vrot.lane.b32.xlu1 %v935_v42, %s1659_s13 }
0x1262   : > { %v938_v44 = vpop.permute.xlu1 %937 }
0x1263   : > { %v940_v45 = vadd.f32 %v938_v44, %v930_v43 }
0x1265   : > { %1490 = vtanh.f32 %v940_v45 }
0x1272   : > { %v1491_v46 = vpop.eup %1490 }
0x1273   : > { %943 = vrot.lane.b32.xlu0 %v1491_v46, %s1660_s15 }
0x12e5   : > { %v944_v47 = vpop.permute.xlu0 %943 }
0x12e6   : > { %v946_v48 = vmul.f32 %v1489_v40, %v944_v47 }
0x12e8   : > { %v953_v49 = vpack.c.bf16 %v946_v48, %v946_v48 }
0x12ea   : > { %v955_v51 = vrot.slane %v953_v49, 3 }
0x12ec   : > { %956 = vrot.lane.b32.xlu1 %v955_v51, %s1661_s16 }
0x135e   : > { %v957_v52 = vpop.permute.xlu1 %956 }
0x135f   : > { %1347 = vmatmul.mubr.msk.bf16.vlgmr.msra.gmra.mxu0 %vm313_vm1, %v957_v52 }
0x141f   : > { %v995_v53 = vpop.f32.mrf.mxu0 }
0x1420   : > { %v1002_v54 = vrot.slane %v995_v53, 1 }
0x1421   : > { %v1348_v55 = vpop.f32.mrf.mxu0 }
0x1422   : > { %v1004_v56 = vadd.f32 %v1002_v54, %v1852_v7  ;;  %v1013_v7 = vrot.slane %v940_v45, 7 }
0x1423   : > { %v998_v57 = vpop.f32.mrf.mxu0 }
0x1424   : > { %1492 = vtanh.f32 %v1004_v56  ;;  %v1267_v60 = vmul.f32 -1.442695, %v1004_v56 }
0x1425   : > { %v1349_v58 = vpop.f32.mrf.mxu0 }
0x1426   : > { %1494 = vpow2.f32 %v1267_v60 }
0x1431   : > { %v1493_v59 = vpop.eup %1492 }
0x1432   : > { %1017 = vrot.lane.b32.xlu0 %v1493_v59, %s1658_s29  ;;  %s1132_s29 = scalar_lea.sflag [#allocation5], %s1817_s18 }
0x1433   : > { %v1495_v62 = vpop.eup %1494 }
0x1434   : > { %v1008_v63 = vadd.f32 1.0, %v1495_v62 }
0x1436   : > { %1496 = vrcp.f32 %v1008_v63 }
0x1443   : > { %v1497_v1 = vpop.eup %1496 }
0x1444   : > { %v1015_v5 = vmul.f32 %v1497_v1, %v1013_v7 }
0x14a4   : > { %v1018_v3 = vpop.permute.xlu0 %1017 }
0x14a5   : > { %v1020_v4 = vmul.f32 %v1497_v1, %v1018_v3 }
0x14a7   : > { %1022 = vrot.lane.b32.xlu1 %v1020_v4, %s1659_s13  ;;  %s1580_s13 = scalar_lea.vmem %s1967_s20, 256 }
0x14a8   : > { %p1581_p5 = scmp.ne.s32.totalorder %s1967_s20, %s1580_s13 }
0x14aa   : > { %p1582_p1 = pnand %p1581_p5, %p2038_p10 }
0x14ab   : > { %434 = vrot.lane.b32.xlu1 %v1858_v28, %s1661_s16 }
0x14ac   : > { %p1583_p2 = pneg %p1582_p1 }
0x14af   : > { %604 = vrot.lane.b32.xlu1 %v1886_v12, %s1661_s16 }
0x14b3   : > { %776 = vrot.lane.b32.xlu1 %v1914_v61, %s1661_s16  ;;  %v1072_v61 = vld [vmem:[%s2018_s4] sm:$0xf] }
0x14b4   : > { %v1086_v13 = vsel %vm1084_vm6, %v1072_v61, 0 }
0x14b5   : > { %1351 = vmatpush3.bf16.msra.mxu1 %v1086_v13 }
0x14b7   : > { %948 = vrot.lane.b32.xlu1 %v946_v48, %s1661_s16 }
0x1519   : > { %v1023_v6 = vpop.permute.xlu1 %1022 }
0x151a   : > { %v1025_v8 = vadd.f32 %v1023_v6, %v1015_v5 }
0x151c   : > { %1498 = vtanh.f32 %v1025_v8 }
0x151d   : > { %v435_v9 = vpop.permute.xlu1 %434 }
0x151e   : > { %438 = vst.msk [vmem:[#allocation2] sm:$0x1] %vm437_vm2, %v435_v9 }
0x1521   : > { %v605_v10 = vpop.permute.xlu1 %604 }
0x1522   : > { %608 = vst.msk [vmem:[#allocation2] sm:$0x4] %vm607_vm3, %v605_v10 }
0x1525   : > { %v777_v28 = vpop.permute.xlu1 %776 }
0x1526   : > { %780 = vst.msk [vmem:[#allocation2] sm:$0x10] %vm779_vm4, %v777_v28 }
0x1529   : > { %v1499_v12 = vpop.eup %1498  ;;  %v949_v11 = vpop.permute.xlu1 %948 }
0x152a   : > { %952 = vst.msk [vmem:[#allocation2] sm:$0x40] %vm951_vm5, %v949_v11  ;;  %1028 = vrot.lane.b32.xlu0 %v1499_v12, %s1660_s15  ;;  %s1584_s15 = sshll.u32 %s1662_s25, 4  ;;  %s1585_s15 = int_to_ptr.vmem [resolvable:$false] %s1584_s15 }
0x152b   : > { %p1587_p6 = scmp.lt.s32.totalorder %s1967_s20, %s1585_s15 }
0x152e   : > { %518 = vrot.lane.b32.xlu0 %v1872_v50, %s1661_s16 }
0x1532   : > { %689 = vrot.lane.b32.xlu0 %v1900_v36, %s1661_s16 }
0x1536   : > { %861 = vrot.lane.b32.xlu0 %v1927_v23, %s1661_s16 }
0x159c   : > { %v1029_v14 = vpop.permute.xlu0 %1028 }
0x159d   : > { %v1031_v2 = vmul.f32 %v1497_v1, %v1029_v14 }
0x159f   : > { %1033 = vrot.lane.b32.xlu0 %v1031_v2, %s1661_s16  ;;  %s1586_s16 = scalar_lea.vmem %s1585_s15, 512 }
0x15a0   : > { %v519_v15 = vpop.permute.xlu0 %518  ;;  %p1588_p11 = scmp.lt.s32.totalorder %s1586_s16, %s1580_s13 }
0x15a1   : > { %522 = vst.msk [vmem:[#allocation2] sm:$0x2] %vm521_vm7, %v519_v15 }
0x15a2   : > { %p1589_p7 = por %p1588_p11, %p1587_p6 }
0x15a4   : > { %v690_v50 = vpop.permute.xlu0 %689  ;;  %p1590_p9 = pnand %p1589_p7, %p1583_p2 }
0x15a5   : > { %693 = vst.msk [vmem:[#allocation2] sm:$0x8] %vm692_vm8, %v690_v50 }
0x15a8   : > { %v862_v36 = vpop.permute.xlu0 %861 }
0x15a9   : > { %865 = vst.msk [vmem:[#allocation2] sm:$0x20] %vm864_vm9, %v862_v36 }
0x1611   : > { %v1034_v16 = vpop.permute.xlu0 %1033 }
0x1612   : > { %1037 = vst.msk [vmem:[#allocation2] sm:$0x80] %vm1036_vm10, %v1034_v16 }
0x1619   : > { %v1038_v17 = vld [vmem:[#allocation2] sm:$0xff] }
0x161a   : > { %1039 = vxpose.xlu1.b32.start.end [1/1] (short) (narrow) %v1038_v17, 16 }
0x1696   : > { %v1055_v18 = vpop.trf.xlu1 }
0x169a   : > { %v1056_v19 = vpop.trf.xlu1 }
0x169b   : > { %v1071_v20 = vpack.c.bf16 %v1056_v19, %v1055_v18 }
0x169d   : > { %1353 = vmatmul.mubr.msk.bf16.vlgmr.msra.gmra.mxu1 %vm1080_vm11, %v1071_v20 }
0x175d   : > { %v1122_v22 = vpop.f32.mrf.mxu1 }
0x175e   : > { %v1123_v23 = vadd.f32 %v1268_v21, %v1122_v22 }
0x175f   : > { %v1354_v24 = vpop.f32.mrf.mxu1 }
0x1760   : > { %1129 = vst [vmem:[%s295_s14] sm:$0xff] %v1123_v23 }
0x1761   : > { %v1125_v25 = vpop.f32.mrf.mxu1 }
0x1762   : > { %v1126_v26 = vadd.f32 %v1268_v21, %v1125_v25 }
0x1763   : > { %v1355_v27 = vpop.f32.mrf.mxu1 }
0x1764   : > { %1130 = vst [vmem:[%s295_s14 + $0x8] sm:$0xff] %v1126_v26 }
0x1765   : > { %1593 = shalt.err (!%p1590_p9)
}
0x1766   : > { %s1594_s17 = scalar_lea.hbm %s1972_s27, 256  ;;  %s1598_s12 = scalar_lea.hbm %s2020_s6, 1024 }
0x1767   : > { %p1595_p12 = scmp.ne.s32.totalorder %s1972_s27, %s1594_s17  ;;  %p1599_p13 = scmp.lt.s32.totalorder %s1972_s27, %s2020_s6 }
0x1768   : > { %p1600_p4 = scmp.lt.s32.totalorder %s1598_s12, %s1594_s17 }
0x1769   : > { %p1596_p3 = pnand %p1595_p12, %p2038_p10 }
0x176a   : > { %p1601_p8 = por %p1600_p4, %p1599_p13 }
0x176b   : > { %p1597_p0 = pneg %p1596_p3 }
0x176d   : > { %p1602_p5 = pnand %p1601_p8, %p1597_p0 }
0x176f   : > { %1605 = shalt.err (!%p1602_p5)
}
0x1770   : > { %s1663_s26 = smov 128   ;;  %s1664_s10 = smov 8  }
0x1771   : > { %1366 = dma.vmem_to_hbm [thread:$0]  (%p2038_p10), %s1967_s20, 256, %s1972_s27, %s1132_s29, %s1663_s26, %s1663_s26, %s1664_s10  }
0x1772 PF: > { %p1388_p1 = scmp.ge.s32.totalorder %s1648_s24, 2  ;;  %s1160_s1 = sand.u32 1, %s1636_s21  }
0x1773   : > { %p2039_p2 = scmp.ne.s32.totalorder %s2027_s28, 0  ;;  %s1161_s13 = scalar_lea.sflag [#allocation5], %s1160_s1 }
0x1775   : > { %p1380_p6 = pnand %p1388_p1, %p2039_p2 }
0x1777   : > { %p1381_p11 = pneg %p1380_p6 }
0x1779   : > { %1631 = dma.done.wait (%p1381_p11), %s1161_s13, 256  }
0x177a   : > { %1633 = vsyncadd (%p1381_p11), %s1161_s13, 4294967040  ;;  %p20_p7 = scmp.ge.s32.totalorder %s1771_s19, 6   ;;  %s2040_s21 = smov %s1640_s22 }
0x177b   : > { %s2041_s22 = smov %s1644_s23  ;;  %s2042_s23 = smov %s1787_s7 }
0x177c   : > { %s2043_s24 = smov %s1771_s19  ;;  %22 = sbr.rel (!%p20_p7) target bundleno = 8 (0x8), region = 97 }
0x1781   :  { %1166 = vsyncpa [#allocation4], 1 }
0x1782   :  { %1168 = vsyncpa [#allocation4 + $0x1], 1 }
0x1783   :  { %1169 = vsyncpa [#allocation7], 1 }
0x1784   :  { %1170 = vsyncpa [#allocation5], 1 }
0x1785   :  { %1172 = vsyncpa [#allocation5 + $0x1], 1 }

</bundles_post_ra>
